<compile_context>
chip_gen: v6e
topology: v6e:2x2x1
jax: 0.10.0
libtpu: 0.0.40
codegen_flags: <defaults>
</compile_context>

<pallas_src>
import jax
import jax.numpy as jnp
from jax import lax
from jax.experimental import pallas as pl
from jax.experimental.pallas import tpu as pltpu

NEG_INF = -1e30  # plain Python float: must NOT be a jnp array (kernel would capture it)


# ----------------------------- Linear + ReLU ---------------------------------

def _linear_relu_kernel(x_ref, wt_ref, b_ref, o_ref):
    o = jnp.dot(x_ref[...], wt_ref[...], preferred_element_type=jnp.float32)
    o_ref[...] = jnp.maximum(o + b_ref[...], 0.0)


def linear_relu(x, w, b, *, tm=128):
    """relu(x @ w.T + b), rows tiled over a parallel grid axis."""
    N, K = x.shape
    H = w.shape[0]
    tm = min(tm, N)
    assert N % tm == 0, "row count must be divisible by the row tile"
    return pl.pallas_call(
        _linear_relu_kernel,
        out_shape=jax.ShapeDtypeStruct((N, H), jnp.float32),
        grid=(N // tm,),
        in_specs=[
            pl.BlockSpec((tm, K), lambda i: (i, 0)),
            pl.BlockSpec((K, H), lambda i: (0, 0)),
            pl.BlockSpec((1, H), lambda i: (0, 0)),
        ],
        out_specs=pl.BlockSpec((tm, H), lambda i: (i, 0)),
        compiler_params=pltpu.CompilerParams(dimension_semantics=("parallel",)),
    )(x, w.T, b.reshape(1, H))


# ------------------------- AGNN propagation (flash-style) --------------------

def _agnn_flash_kernel(beta_ref, hq_ref, hk_ref, mask_ref, o_ref,
                       m_sc, l_sc, acc_sc):
    ki = pl.program_id(1)

    @pl.when(ki == 0)
    def _():
        m_sc[...] = jnp.full_like(m_sc, -jnp.inf)
        l_sc[...] = jnp.zeros_like(l_sc)
        acc_sc[...] = jnp.zeros_like(acc_sc)

    hq = hq_ref[...]                         # (tq, H) raw features
    hk = hk_ref[...]                         # (tk, H) raw features (softmax values too)

    # Row L2 normalization via EUP rsqrt; == h / max(||h||_2, 1e-12) (F.normalize).
    nq = hq * lax.rsqrt(jnp.maximum(jnp.sum(hq * hq, axis=-1, keepdims=True), 1e-24))
    nk = hk * lax.rsqrt(jnp.maximum(jnp.sum(hk * hk, axis=-1, keepdims=True), 1e-24))

    # Fold beta into the (tq, H) operand instead of scaling the (tq, tk) score tile.
    nq = nq * beta_ref[0]

    # Cosine similarity: contract last dims directly (no materialized transpose).
    s = lax.dot_general(nq, nk, dimension_numbers=(((1,), (1,)), ((), ())),
                        preferred_element_type=jnp.float32)        # (tq, tk)

    # Mask non-edges (int8 adjacency mask incl. self loops).
    s = jnp.where(mask_ref[...] != 0, s, NEG_INF)

    # Online softmax update.
    m_prev = m_sc[...]
    m_new = jnp.maximum(m_prev, jnp.max(s, axis=-1, keepdims=True))
    scale = jnp.exp(m_prev - m_new)
    p = jnp.exp(s - m_new)
    l_sc[...] = scale * l_sc[...] + jnp.sum(p, axis=-1, keepdims=True)
    acc_sc[...] = scale * acc_sc[...] + jnp.dot(p, hk,
                                                preferred_element_type=jnp.float32)
    m_sc[...] = m_new

    @pl.when(ki == pl.num_programs(1) - 1)
    def _():
        # Deferred normalization: one (tq, H) multiply with an EUP approx reciprocal
        # (self-loops guarantee l >= exp(0) > 0 for every row).
        o_ref[...] = acc_sc[...] * pl.reciprocal(l_sc[...], approx=True)


def agnn_propagate(h, mask_i8, beta, *, tq=128, tk=128):
    """One AGNNConv propagation step: out = softmax(beta * cos-sim, masked) @ h."""
    N, H = h.shape
    tq = min(tq, N)
    tk = min(tk, N)
    assert N % tq == 0 and N % tk == 0, "N must be divisible by the tile sizes"
    beta_arr = jnp.asarray([beta], dtype=jnp.float32)

    cost = pl.CostEstimate(
        flops=4 * N * N * H,                      # sim matmul + aggregation matmul
        transcendentals=2 * N * N,                # exp over the score tiles
        bytes_accessed=(N // tq + 2) * N * H * 4 + N * N,
    )
    return pl.pallas_call(
        _agnn_flash_kernel,
        out_shape=jax.ShapeDtypeStruct((N, H), jnp.float32),
        grid=(N // tq, N // tk),
        in_specs=[
            pl.BlockSpec(memory_space=pltpu.MemorySpace.SMEM),      # beta (1,) scalar
            pl.BlockSpec((tq, H), lambda qi, ki: (qi, 0)),          # query rows of h
            pl.BlockSpec((tk, H), lambda qi, ki: (ki, 0)),          # key/value rows of h
            pl.BlockSpec((tq, tk), lambda qi, ki: (qi, ki)),        # int8 edge-mask tile
        ],
        out_specs=pl.BlockSpec((tq, H), lambda qi, ki: (qi, 0)),
        scratch_shapes=[
            pltpu.VMEM((tq, 1), jnp.float32),     # running max  m
            pltpu.VMEM((tq, 1), jnp.float32),     # running sum  l
            pltpu.VMEM((tq, H), jnp.float32),     # running weighted value sum
        ],
        compiler_params=pltpu.CompilerParams(
            dimension_semantics=("parallel", "arbitrary")),
        cost_estimate=cost,
    )(beta_arr, h, h, mask_i8)


# ----------------------------- Full module forward ---------------------------

def relation_attention(x, adj, w1, b1, w2, b2, beta1, beta2):
    """x: (N, C_in) f32, adj: (N, N) f32 dense adjacency."""
    N = x.shape[0]
    # PyG AGNNConv(add_self_loops=True) attention pattern: edge j->i iff adj[j, i] != 0,
    # plus a self loop for every node; edge weights ignored.  int8 keeps the (N, N)
    # transfer 4x smaller than f32.
    mask = jnp.logical_or(adj.T != 0, jnp.eye(N, dtype=bool)).astype(jnp.int8)

    h = linear_relu(x, w1, b1)            # dropout p=0.3 is identity in eval mode
    h = agnn_propagate(h, mask, beta1)    # prop1: beta fixed = 1.0
    h = agnn_propagate(h, mask, beta2)    # prop2: beta learnable, init 1.0
    return linear_relu(h, w2, b2)         # second dropout identity in eval mode


# ----------------------------- Pure-JAX reference ----------------------------

def reference_jax(x, adj, w1, b1, w2, b2, beta1, beta2):
    N = x.shape[0]
    mask = (adj.T != 0).astype(jnp.float32)
    mask = jnp.maximum(mask, jnp.eye(N, dtype=jnp.float32))
    h = jax.nn.relu(x @ w1.T + b1)

    def agnn(h, beta):
        n = h / jnp.maximum(jnp.linalg.norm(h, axis=-1, keepdims=True), 1e-12)
        sim = n @ n.T
        scores = jnp.where(mask > 0, beta * sim, -1e30)
        p = jax.nn.softmax(scores, axis=-1)
        return p @ h

    h = agnn(h, beta1)
    h = agnn(h, beta2)
    return jax.nn.relu(h @ w2.T + b2)


if __name__ == "__main__":
    N, C_IN, HID = 128, 32, 128

    key = jax.random.PRNGKey(0)
    kx, ka, k1, k2, k3, k4 = jax.random.split(key, 6)

    x = jax.random.normal(kx, (N, C_IN), dtype=jnp.float32)
    adj = (jax.random.uniform(ka, (N, N)) < 0.1).astype(jnp.float32)

    # Deterministic parameter init (PyTorch Linear shapes: weight (out, in), bias (out,))
    w1 = jax.random.normal(k1, (HID, C_IN), dtype=jnp.float32) * 0.1
    b1 = jax.random.normal(k2, (HID,), dtype=jnp.float32) * 0.01
    w2 = jax.random.normal(k3, (HID, HID), dtype=jnp.float32) * 0.1
    b2 = jax.random.normal(k4, (HID,), dtype=jnp.float32) * 0.01
    beta1 = 1.0   # prop1: requires_grad=False, fill_(1)
    beta2 = 1.0   # prop2: requires_grad=True,  fill_(1)

    out = relation_attention(x, adj, w1, b1, w2, b2, beta1, beta2)
    out = jax.block_until_ready(out)

    ref = reference_jax(x, adj, w1, b1, w2, b2, beta1, beta2)
    assert out.shape == (N, HID)
    # Slightly looser than 1e-3 purely to leave headroom for the EUP approximate
    # reciprocal used for the deferred softmax normalization.
    assert jnp.allclose(out, ref, rtol=2e-3, atol=2e-3), "mismatch vs JAX reference"

    print("KERNEL_OK")
</pallas_src>

<mosaic_0001>
module attributes {stable_mosaic.version = 11 : i64} {
  func.func @_linear_relu_kernel(%arg0: i32, %arg1: memref<128x32xf32, #tpu.memory_space<vmem>>, %arg2: memref<32x128xf32, #tpu.memory_space<vmem>>, %arg3: memref<1x128xf32, #tpu.memory_space<vmem>>, %arg4: memref<128x128xf32, #tpu.memory_space<vmem>>) attributes {dimension_semantics = [#tpu.dimension_semantics<parallel>], iteration_bounds = array<i64: 1>, scalar_prefetch = 0 : i64, scratch_operands = 0 : i64, tpu.core_type = #tpu.core_type<tc>, window_params = [{transform_indices = @transform_0, window_bounds = array<i64: 128, 32>}, {pipeline_mode = #tpu.pipeline_mode<synchronous>, transform_indices = @transform_1, window_bounds = array<i64: 32, 128>}, {pipeline_mode = #tpu.pipeline_mode<synchronous>, transform_indices = @transform_2, window_bounds = array<i64: 1, 128>}, {transform_indices = @transform_3, window_bounds = array<i64: 128, 128>}]} {
    %c0 = arith.constant 0 : index
    %c0_0 = arith.constant 0 : index
    %0 = vector.load %arg1[%c0, %c0_0] : memref<128x32xf32, #tpu.memory_space<vmem>>, vector<128x32xf32>
    %c0_1 = arith.constant 0 : index
    %c0_2 = arith.constant 0 : index
    %1 = vector.load %arg2[%c0_1, %c0_2] : memref<32x128xf32, #tpu.memory_space<vmem>>, vector<32x128xf32>
    %cst = arith.constant dense<0.000000e+00> : vector<128x128xf32>
    %2 = tpu.matmul %0, %1, %cst {dimension_numbers = #tpu.dot_dimension_numbers<[1], [0], [0], [1], [0, 0, 1, 1], [], []>} : vector<128x32xf32>, vector<32x128xf32>, vector<128x128xf32> -> vector<128x128xf32>
    %c0_3 = arith.constant 0 : index
    %c0_4 = arith.constant 0 : index
    %3 = vector.load %arg3[%c0_3, %c0_4] : memref<1x128xf32, #tpu.memory_space<vmem>>, vector<1x128xf32>
    %4 = vector.broadcast %3 : vector<1x128xf32> to vector<128x128xf32>
    %5 = arith.addf %2, %4 : vector<128x128xf32>
    %cst_5 = arith.constant 0.000000e+00 : f32
    %6 = vector.broadcast %cst_5 : f32 to vector<128x128xf32>
    %7 = arith.maximumf %5, %6 : vector<128x128xf32>
    %c0_6 = arith.constant 0 : index
    %c0_7 = arith.constant 0 : index
    %8 = vector.load %arg4[%c0_6, %c0_7] : memref<128x128xf32, #tpu.memory_space<vmem>>, vector<128x128xf32>
    tpu.vector_store %arg4[%c0_6, %c0_7], %7 {strides = array<i32>} : memref<128x128xf32, #tpu.memory_space<vmem>>, vector<128x128xf32>,
    return
  }
  func.func @transform_0(%arg0: i32) -> (i32, i32) {
    %c0_i32 = arith.constant 0 : i32
    %c0_i32_0 = arith.constant 0 : i32
    return %arg0, %c0_i32 : i32, i32
  }
  func.func @transform_1(%arg0: i32) -> (i32, i32) {
    %c0_i32 = arith.constant 0 : i32
    %c0_i32_0 = arith.constant 0 : i32
    %c0_i32_1 = arith.constant 0 : i32
    return %c0_i32, %c0_i32_0 : i32, i32
  }
  func.func @transform_2(%arg0: i32) -> (i32, i32) {
    %c0_i32 = arith.constant 0 : i32
    %c0_i32_0 = arith.constant 0 : i32
    %c0_i32_1 = arith.constant 0 : i32
    return %c0_i32, %c0_i32_0 : i32, i32
  }
  func.func @transform_3(%arg0: i32) -> (i32, i32) {
    %c0_i32 = arith.constant 0 : i32
    %c0_i32_0 = arith.constant 0 : i32
    return %arg0, %c0_i32 : i32, i32
  }
}

</mosaic_0001>

<bundles_post_ra>
// kernel: tpu_custom_call.1
= control target key start
LH: loop header
LB: loop body
LE: loop exit
PB: predicated region body
PF: predicated region fallthrough
CT: control target
= control target key end

     0   :  { %vm42_vm0 = vcmask 261120   ;;  %s491_s0 = inlined_call_operand.vmem [shape: f32[128,32], index: 0, kind: input, shape index: {}]   ;;  %s492_s1 = inlined_call_operand.vmem [shape: f32[32,128], index: 1, kind: input, shape index: {}]   ;;  %s493_s2 = inlined_call_operand.vmem [shape: f32[1,128], index: 2, kind: input, shape index: {}]   ;;  %s494_s3 = inlined_call_operand.hbm [shape: f32[128,128], index: 3, kind: output, shape index: {}]  }
   0x1   :  { %v34_v0 = vld [vmem:[%s492_s1 + $0x18] sm:$0xff]  ;;  %v33_v1 = vld [vmem:[%s492_s1 + $0x10] sm:$0xff]  ;;  %v32_v2 = vld [vmem:[%s492_s1 + $0x8] sm:$0xff] }
   0x2   :  { %321 = vmatprep.subr.mxu0 %v34_v0  ;;  %353 = vmatprep.subr.mxu1 %v34_v0  ;;  %v31_v3 = vld [vmem:[%s492_s1] sm:$0xff] }
   0x3   :  { %322 = vmatpush3.msra.mxu0 %v34_v0  ;;  %357 = vmatpush3.msra.mxu1 %v34_v0  ;;  %v15_v4 = vld [vmem:[%s491_s0] sm:$0xff] }
   0x4   :  { %323 = vmatprep.subr.mxu0 %v33_v1  ;;  %354 = vmatprep.subr.mxu1 %v33_v1  ;;  %v23_v5 = vld [vmem:[%s491_s0 + $0x40] sm:$0xff] }
   0x5   :  { %324 = vmatpush3.msra.mxu0 %v33_v1  ;;  %358 = vmatpush3.msra.mxu1 %v33_v1 }
   0x6   :  { %325 = vmatprep.subr.mxu0 %v32_v2  ;;  %355 = vmatprep.subr.mxu1 %v32_v2 }
   0x7   :  { %326 = vmatpush3.msra.mxu0 %v32_v2  ;;  %359 = vmatpush3.msra.mxu1 %v32_v2 }
   0x8   :  { %8 = vsyncpa [#allocation3], 0  ;;  %327 = vmatprep.subr.mxu0 %v31_v3  ;;  %356 = vmatprep.subr.mxu1 %v31_v3  ;;  %v16_v6 = vld [vmem:[%s491_s0 + $0x8] sm:$0xff]  ;;  %v17_v8 = vld [vmem:[%s491_s0 + $0x10] sm:$0xff] }
   0x9   :  { %v24_v7 = vld [vmem:[%s491_s0 + $0x48] sm:$0xff]  ;;  %328 = vmatpush3.msra.mxu0 %v31_v3  ;;  %360 = vmatpush3.msra.mxu1 %v31_v3  ;;  %v25_v9 = vld [vmem:[%s491_s0 + $0x50] sm:$0xff]  ;;  %v18_v10 = vld [vmem:[%s491_s0 + $0x18] sm:$0xff] }
   0xa   :  { %329 = vmatprep.mubr.msk.f32.mxu0 %vm42_vm0, %v15_v4  ;;  %341 = vmatprep.mubr.msk.f32.mxu1 %vm42_vm0, %v23_v5  ;;  %v26_v11 = vld [vmem:[%s491_s0 + $0x58] sm:$0xff]  ;;  %v19_v12 = vld [vmem:[%s491_s0 + $0x20] sm:$0xff]  ;;  %v20_v14 = vld [vmem:[%s491_s0 + $0x28] sm:$0xff] }
   0xb   :  { %330 = vmatmul.mubr.msk.f32.vlgmr.msra.gmra.mxu0 %vm42_vm0, %v16_v6  ;;  %342 = vmatmul.mubr.msk.f32.vlgmr.msra.gmra.mxu1 %vm42_vm0, %v24_v7  ;;  %v27_v13 = vld [vmem:[%s491_s0 + $0x60] sm:$0xff]  ;;  %v28_v15 = vld [vmem:[%s491_s0 + $0x68] sm:$0xff]  ;;  %v21_v16 = vld [vmem:[%s491_s0 + $0x30] sm:$0xff] }
   0xc   :  { %332 = vmatprep.mubr.msk.f32.mxu0 %vm42_vm0, %v17_v8  ;;  %344 = vmatprep.mubr.msk.f32.mxu1 %vm42_vm0, %v25_v9  ;;  %v29_v17 = vld [vmem:[%s491_s0 + $0x70] sm:$0xff]  ;;  %v22_v18 = vld [vmem:[%s491_s0 + $0x38] sm:$0xff]  ;;  %v284_v20 = vld [vmem:[%s493_s2] ss:$0 sm:$0xff] }
   0xd   :  { %v30_v19 = vld [vmem:[%s491_s0 + $0x78] sm:$0xff]  ;;  %s386_s0 = smov [#allocation2]  }
   0xe   :  { %s273_s2 = sshll.u32 %s386_s0, 4  ;;  %s274_s2 = int_to_ptr.vmem [resolvable:$true] %s273_s2 }
   0xf   :  { %333 = vmatmul.mubr.msk.f32.gmra.mxu0 %vm42_vm0, %v18_v10  ;;  %345 = vmatmul.mubr.msk.f32.gmra.mxu1 %vm42_vm0, %v26_v11  ;;  %s364_s1 = scalar_lea.vmem %s274_s2, 2048  ;;  %p369_p1 = scmp.lt.s32.totalorder %s274_s2, %s274_s2 }
  0x10   :  { %335 = vmatprep.mubr.msk.f32.mxu0 %vm42_vm0, %v19_v12  ;;  %347 = vmatprep.mubr.msk.f32.mxu1 %vm42_vm0, %v27_v13  ;;  %p365_p0 = scmp.ne.s32.totalorder %s274_s2, %s364_s1  ;;  %p370_p2 = scmp.lt.s32.totalorder %s364_s1, %s364_s1 }
  0x12   :  { %p371_p3 = por %p370_p2, %p369_p1 }
  0x13   :  { %336 = vmatmul.mubr.msk.f32.gmra.mxu0 %vm42_vm0, %v20_v14  ;;  %348 = vmatmul.mubr.msk.f32.gmra.mxu1 %vm42_vm0, %v28_v15 }
  0x14   :  { %338 = vmatprep.mubr.msk.f32.mxu0 %vm42_vm0, %v21_v16  ;;  %350 = vmatprep.mubr.msk.f32.mxu1 %vm42_vm0, %v29_v17  ;;  %p372_p4 = pnand %p371_p3, %p365_p0 }
  0x17   :  { %339 = vmatmul.mubr.msk.f32.gmra.mxu0 %vm42_vm0, %v22_v18  ;;  %351 = vmatmul.mubr.msk.f32.gmra.mxu1 %vm42_vm0, %v30_v19 }
  0xcb   :  { %v331_v21 = vpop.f32.mrf.mxu0  ;;  %v343_v22 = vpop.f32.mrf.mxu1 }
  0xcc   :  { %v163_v23 = vadd.f32 %v331_v21, %v284_v20  ;;  %v203_v24 = vadd.f32 %v343_v22, %v284_v20 }
  0xcd   :  { %v157_v25 = vpop.f32.mrf.mxu0  ;;  %v197_v26 = vpop.f32.mrf.mxu1 }
  0xce   :  { %v237_v27 = vmax.f32 %v163_v23, 0.0  ;;  %v245_v28 = vmax.f32 %v203_v24, 0.0  ;;  %v158_v29 = vadd.f32 %v284_v20, %v157_v25  ;;  %v198_v30 = vadd.f32 %v284_v20, %v197_v26 }
  0xcf   :  { %v334_v31 = vpop.f32.mrf.mxu0  ;;  %v346_v32 = vpop.f32.mrf.mxu1 }
  0xd0   :  { %253 = vst [vmem:[#allocation2 + $0x8] sm:$0xff] %v237_v27  ;;  %261 = vst [vmem:[#allocation2 + $0x48] sm:$0xff] %v245_v28  ;;  %v236_v33 = vmax.f32 %v158_v29, 0.0  ;;  %v244_v34 = vmax.f32 %v198_v30, 0.0  ;;  %v173_v35 = vadd.f32 %v334_v31, %v284_v20  ;;  %v213_v36 = vadd.f32 %v346_v32, %v284_v20 }
  0xd1   :  { %v167_v37 = vpop.f32.mrf.mxu0  ;;  %v207_v38 = vpop.f32.mrf.mxu1 }
  0xd2   :  { %252 = vst [vmem:[#allocation2] sm:$0xff] %v236_v33  ;;  %260 = vst [vmem:[#allocation2 + $0x40] sm:$0xff] %v244_v34  ;;  %v239_v39 = vmax.f32 %v173_v35, 0.0  ;;  %v247_v40 = vmax.f32 %v213_v36, 0.0  ;;  %v168_v41 = vadd.f32 %v284_v20, %v167_v37  ;;  %v208_v42 = vadd.f32 %v284_v20, %v207_v38 }
  0xd3   :  { %v337_v43 = vpop.f32.mrf.mxu0  ;;  %v349_v44 = vpop.f32.mrf.mxu1 }
  0xd4   :  { %255 = vst [vmem:[#allocation2 + $0x18] sm:$0xff] %v239_v39  ;;  %263 = vst [vmem:[#allocation2 + $0x58] sm:$0xff] %v247_v40  ;;  %v238_v45 = vmax.f32 %v168_v41, 0.0  ;;  %v246_v46 = vmax.f32 %v208_v42, 0.0  ;;  %v183_v47 = vadd.f32 %v337_v43, %v284_v20  ;;  %v223_v48 = vadd.f32 %v349_v44, %v284_v20 }
  0xd5   :  { %v177_v49 = vpop.f32.mrf.mxu0  ;;  %v217_v50 = vpop.f32.mrf.mxu1 }
  0xd6   :  { %254 = vst [vmem:[#allocation2 + $0x10] sm:$0xff] %v238_v45  ;;  %262 = vst [vmem:[#allocation2 + $0x50] sm:$0xff] %v246_v46  ;;  %v241_v51 = vmax.f32 %v183_v47, 0.0  ;;  %v249_v52 = vmax.f32 %v223_v48, 0.0  ;;  %v178_v53 = vadd.f32 %v284_v20, %v177_v49  ;;  %v218_v54 = vadd.f32 %v284_v20, %v217_v50 }
  0xd7   :  { %v340_v55 = vpop.f32.mrf.mxu0  ;;  %v352_v56 = vpop.f32.mrf.mxu1 }
  0xd8   :  { %257 = vst [vmem:[#allocation2 + $0x28] sm:$0xff] %v241_v51  ;;  %265 = vst [vmem:[#allocation2 + $0x68] sm:$0xff] %v249_v52  ;;  %v240_v57 = vmax.f32 %v178_v53, 0.0  ;;  %v248_v58 = vmax.f32 %v218_v54, 0.0  ;;  %v193_v59 = vadd.f32 %v340_v55, %v284_v20  ;;  %v233_v60 = vadd.f32 %v352_v56, %v284_v20 }
  0xd9   :  { %v187_v61 = vpop.f32.mrf.mxu0  ;;  %v227_v62 = vpop.f32.mrf.mxu1 }
  0xda   :  { %256 = vst [vmem:[#allocation2 + $0x20] sm:$0xff] %v240_v57  ;;  %264 = vst [vmem:[#allocation2 + $0x60] sm:$0xff] %v248_v58  ;;  %v243_v63 = vmax.f32 %v193_v59, 0.0  ;;  %v251_v0 = vmax.f32 %v233_v60, 0.0  ;;  %v188_v1 = vadd.f32 %v284_v20, %v187_v61  ;;  %v228_v2 = vadd.f32 %v284_v20, %v227_v62 }
  0xdc   :  { %259 = vst [vmem:[#allocation2 + $0x38] sm:$0xff] %v243_v63  ;;  %267 = vst [vmem:[#allocation2 + $0x78] sm:$0xff] %v251_v0  ;;  %v242_v3 = vmax.f32 %v188_v1, 0.0  ;;  %v250_v4 = vmax.f32 %v228_v2, 0.0 }
  0xde   :  { %258 = vst [vmem:[#allocation2 + $0x30] sm:$0xff] %v242_v3  ;;  %266 = vst [vmem:[#allocation2 + $0x70] sm:$0xff] %v250_v4 }
  0xdf   :  { %375 = shalt.err (!%p372_p4)
}
  0xe0   :  { %s387_s26 = smov 128   ;;  %s388_s27 = smov 8  }
  0xe1   :  { %279 = dma.vmem_to_hbm [thread:$0]  %s274_s2, 2048, %s494_s3, [#allocation3], %s387_s26, %s387_s26, %s388_s27  }
  0xe2   :  { %384 = dma.done.wait [#allocation3], 2048  }
  0xe3   :  { %385 = vsyncadd [#allocation3], 4294965248 }
  0xe4   :  { %283 = vsyncpa [#allocation3], 1 }

</bundles_post_ra>
